<compile_context>
chip_gen: v6e
topology: v6e:2x2x1
jax: 0.10.0
libtpu: 0.0.40
codegen_flags: <defaults>
</compile_context>

<pallas_src>
import jax
import jax.numpy as jnp
from jax import lax
from jax.experimental import pallas as pl
from jax.experimental.pallas import tpu as pltpu

EPS = 1e-5


def frozen_bn_kernel(x_ref, scale_ref, shift_ref, o_ref):
    # x_ref / o_ref: (tile_rows, tile_cols); scale_ref / shift_ref: (tile_rows, 1).
    x = x_ref[...].astype(jnp.float32)
    o_ref[...] = (x * scale_ref[...] + shift_ref[...]).astype(o_ref.dtype)


def frozen_batch_norm2d(x, weight, bias, running_mean, running_var, eps=EPS):
    """x: (N, C, H, W); params: (C,) float32. Returns (N, C, H, W) in x.dtype."""
    N, C, H, W = x.shape
    rows, cols = N * C, H * W
    itemsize = jnp.dtype(x.dtype).itemsize

    # ---- fold frozen stats into scale/shift once (wrapper-side, tiny) --------------
    scale = weight.astype(jnp.float32) * lax.rsqrt(running_var.astype(jnp.float32) + eps)
    shift = bias.astype(jnp.float32) - running_mean.astype(jnp.float32) * scale
    # Per-channel -> per-row columns: row n*C + c maps to channel c.
    scale2 = jnp.tile(scale, N).reshape(rows, 1)
    shift2 = jnp.tile(shift, N).reshape(rows, 1)

    x2 = x.reshape(rows, cols)  # free row-major reshape; lane-dense last dim

    # ---- tile selection -------------------------------------------------------------
    # Lane (last-dim) tile: a 128-multiple up to 1024 lanes; otherwise the full width
    # (allowed when the block equals the full array dim; edge tiles are masked).
    if cols >= 1024:
        tile_cols = 1024
    elif cols % 128 == 0:
        tile_cols = cols
    else:
        tile_cols = cols

    # Row (sublane) tile: multiple of 8 (16 for bf16 packing), sized so one tile
    # buffer is ~<=2 MiB -> double-buffered I/O fits every generation's scoped VMEM.
    sub = 16 if x.dtype == jnp.bfloat16 else 8
    target_tile_bytes = 2 * 1024 * 1024
    max_tile_rows = max(sub, (target_tile_bytes // (tile_cols * itemsize)) // sub * sub)
    tile_rows = rows if rows <= max_tile_rows else max_tile_rows

    grid = (pl.cdiv(rows, tile_rows), pl.cdiv(cols, tile_cols))

    x_spec = pl.BlockSpec((tile_rows, tile_cols), lambda i, j: (i, j))
    p_spec = pl.BlockSpec((tile_rows, 1), lambda i, j: (i, 0))  # keep params in VMEM

    cost = pl.CostEstimate(
        flops=2 * rows * cols,
        transcendentals=0,
        bytes_accessed=2 * rows * cols * itemsize + 2 * rows * 4,
    )

    out = pl.pallas_call(
        frozen_bn_kernel,
        grid=grid,
        in_specs=[x_spec, p_spec, p_spec],
        out_specs=x_spec,
        out_shape=jax.ShapeDtypeStruct((rows, cols), x.dtype),
        compiler_params=pltpu.CompilerParams(
            dimension_semantics=("parallel", "parallel"),  # lets v7x megacore shard steps
        ),
        cost_estimate=cost,
    )(x2, scale2, shift2)
    return out.reshape(N, C, H, W)


# ----------------------- pure-JAX reference (for checking) -----------------------
def ref_frozen_bn(x, w, b, rm, rv, eps=EPS):
    scale = w.reshape(1, -1, 1, 1) * lax.rsqrt(rv.reshape(1, -1, 1, 1) + eps)
    shift = b.reshape(1, -1, 1, 1) - rm.reshape(1, -1, 1, 1) * scale
    return (x.astype(jnp.float32) * scale + shift).astype(x.dtype)


if __name__ == "__main__":
    N, C, H, W = 2, 4, 16, 16
    key = jax.random.PRNGKey(0)
    kx, kw, kb, km, kv = jax.random.split(key, 5)

    x = jax.random.normal(kx, (N, C, H, W), dtype=jnp.float32)
    weight = 1.0 + 0.1 * jax.random.normal(kw, (C,), dtype=jnp.float32)
    bias = 0.1 * jax.random.normal(kb, (C,), dtype=jnp.float32)
    running_mean = 0.1 * jax.random.normal(km, (C,), dtype=jnp.float32)
    running_var = jax.random.uniform(kv, (C,), dtype=jnp.float32,
                                     minval=0.5, maxval=1.5)

    out = frozen_batch_norm2d(x, weight, bias, running_mean, running_var)
    out = jax.block_until_ready(out)

    ref = ref_frozen_bn(x, weight, bias, running_mean, running_var)
    assert out.shape == (N, C, H, W)
    assert jnp.allclose(out, ref, atol=1e-5, rtol=1e-5), "mismatch vs reference"

    print("KERNEL_OK")
</pallas_src>

<mosaic_0001>
module attributes {stable_mosaic.version = 11 : i64} {
  func.func @frozen_bn_kernel(%arg0: i32, %arg1: i32, %arg2: memref<8x256xf32, #tpu.memory_space<vmem>>, %arg3: memref<8x1xf32, #tpu.memory_space<vmem>>, %arg4: memref<8x1xf32, #tpu.memory_space<vmem>>, %arg5: memref<8x256xf32, #tpu.memory_space<vmem>>) attributes {dimension_semantics = [#tpu.dimension_semantics<parallel>, #tpu.dimension_semantics<parallel>], iteration_bounds = array<i64: 1, 1>, scalar_prefetch = 0 : i64, scratch_operands = 0 : i64, tpu.core_type = #tpu.core_type<tc>, window_params = [{transform_indices = @transform_0, window_bounds = array<i64: 8, 256>}, {transform_indices = @transform_1, window_bounds = array<i64: 8, 1>}, {transform_indices = @transform_2, window_bounds = array<i64: 8, 1>}, {transform_indices = @transform_3, window_bounds = array<i64: 8, 256>}]} {
    %c0 = arith.constant 0 : index
    %c0_0 = arith.constant 0 : index
    %0 = vector.load %arg2[%c0, %c0_0] : memref<8x256xf32, #tpu.memory_space<vmem>>, vector<8x256xf32>
    %c0_1 = arith.constant 0 : index
    %c0_2 = arith.constant 0 : index
    %1 = vector.load %arg3[%c0_1, %c0_2] : memref<8x1xf32, #tpu.memory_space<vmem>>, vector<8x1xf32>
    %2 = vector.broadcast %1 : vector<8x1xf32> to vector<8x256xf32>
    %3 = arith.mulf %0, %2 : vector<8x256xf32>
    %c0_3 = arith.constant 0 : index
    %c0_4 = arith.constant 0 : index
    %4 = vector.load %arg4[%c0_3, %c0_4] : memref<8x1xf32, #tpu.memory_space<vmem>>, vector<8x1xf32>
    %5 = vector.broadcast %4 : vector<8x1xf32> to vector<8x256xf32>
    %6 = arith.addf %3, %5 : vector<8x256xf32>
    %c0_5 = arith.constant 0 : index
    %c0_6 = arith.constant 0 : index
    %7 = vector.load %arg5[%c0_5, %c0_6] : memref<8x256xf32, #tpu.memory_space<vmem>>, vector<8x256xf32>
    tpu.vector_store %arg5[%c0_5, %c0_6], %6 {strides = array<i32>} : memref<8x256xf32, #tpu.memory_space<vmem>>, vector<8x256xf32>,
    return
  }
  func.func @transform_0(%arg0: i32, %arg1: i32) -> (i32, i32) {
    %c0_i32 = arith.constant 0 : i32
    return %arg0, %arg1 : i32, i32
  }
  func.func @transform_1(%arg0: i32, %arg1: i32) -> (i32, i32) {
    %c0_i32 = arith.constant 0 : i32
    %c0_i32_0 = arith.constant 0 : i32
    return %arg0, %c0_i32 : i32, i32
  }
  func.func @transform_2(%arg0: i32, %arg1: i32) -> (i32, i32) {
    %c0_i32 = arith.constant 0 : i32
    %c0_i32_0 = arith.constant 0 : i32
    return %arg0, %c0_i32 : i32, i32
  }
  func.func @transform_3(%arg0: i32, %arg1: i32) -> (i32, i32) {
    %c0_i32 = arith.constant 0 : i32
    return %arg0, %arg1 : i32, i32
  }
}

</mosaic_0001>

<bundles_post_ra>
// kernel: tpu_custom_call.1
= control target key start
LH: loop header
LB: loop body
LE: loop exit
PB: predicated region body
PF: predicated region fallthrough
CT: control target
= control target key end

     0   :  { %v74_v1 = vmov 0   ;;  %s111_s0 = inlined_call_operand.vmem [shape: f32[8,256], index: 0, kind: input, shape index: {}]   ;;  %s112_s1 = inlined_call_operand.vmem [shape: f32[8,1], index: 1, kind: input, shape index: {}]   ;;  %s113_s2 = inlined_call_operand.vmem [shape: f32[8,1], index: 2, kind: input, shape index: {}]   ;;  %s114_s3 = inlined_call_operand.hbm [shape: f32[8,256], index: 3, kind: output, shape index: {}]  }
   0x1   :  { %v17_v0 = vld [vmem:[%s112_s1] sm:$0xff]  ;;  %51 = vset.pattern.permute.xlu0 %v74_v1 }
   0x2   :  { %8 = vsyncpa [#allocation3], 0  ;;  %20 = vperm.xlu0 %51, %v17_v0   ;;  %v25_v2 = vld [vmem:[%s113_s2] sm:$0xff]  ;;  %v16_v5 = vld [vmem:[%s111_s0 + $0x8] sm:$0xff]  ;;  %s75_s20 = smov [#allocation2]  }
   0x3   :  { %v15_v4 = vld [vmem:[%s111_s0] sm:$0xff]  ;;  %s41_s1 = sshll.u32 %s75_s20, 4  ;;  %s42_s1 = int_to_ptr.vmem [resolvable:$true] %s41_s1 }
   0x4   :  { %s52_s2 = scalar_lea.vmem %s42_s1, 256  ;;  %p57_p1 = scmp.lt.s32.totalorder %s42_s1, %s42_s1 }
   0x5   :  { %p53_p0 = scmp.ne.s32.totalorder %s42_s1, %s52_s2  ;;  %p58_p2 = scmp.lt.s32.totalorder %s52_s2, %s52_s2 }
   0x6   :  { %28 = vperm.xlu0 %51, %v25_v2  }
   0x7   :  { %p59_p3 = por %p58_p2, %p57_p1 }
   0x9   :  { %p60_p4 = pnand %p59_p3, %p53_p0 }
  0x7d   :  { %v21_v3 = vpop.permute.xlu0 %20 }
  0x7e   :  { %v23_v6 = vmul.f32 %v21_v3, %v15_v4  ;;  %v24_v7 = vmul.f32 %v21_v3, %v16_v5 }
  0x81   :  { %v29_v8 = vpop.permute.xlu0 %28 }
  0x82   :  { %v31_v9 = vadd.f32 %v29_v8, %v23_v6  ;;  %v32_v10 = vadd.f32 %v29_v8, %v24_v7 }
  0x84   :  { %33 = vst [vmem:[#allocation2] sm:$0xff] %v31_v9  ;;  %34 = vst [vmem:[#allocation2 + $0x8] sm:$0xff] %v32_v10 }
  0x85   :  { %63 = shalt.err (!%p60_p4)
}
  0x86   :  { %44 = dma.vmem_to_hbm [thread:$0]  %s42_s1, 256, %s114_s3, [#allocation3]  }
  0x87   :  { %72 = dma.done.wait [#allocation3], 256  }
  0x88   :  { %73 = vsyncadd [#allocation3], 4294967040 }
  0x89   :  { %48 = vsyncpa [#allocation3], 1 }

</bundles_post_ra>
